<compile_context>
chip_gen: v7x
topology: tpu7x:2x2x1
jax: 0.10.0
libtpu: 0.0.40
codegen_flags: <defaults>
</compile_context>

<pallas_src>
import functools

import jax
import jax.numpy as jnp
import numpy as np
from jax import lax
from jax.experimental import pallas as pl
from jax.experimental.pallas import tpu as pltpu


def _round_up(x, m):
    return ((x + m - 1) // m) * m


def _vmem_capacity_bytes():
    try:
        return int(pltpu.get_tpu_info().vmem_capacity_bytes)
    except Exception:
        return 64 * 1024 * 1024  # conservative (v7x per-TensorCore)


# Contract the last dim of both operands: x(…,K) @ w(…,K)^T
_DN_LAST = (((1,), (1,)), ((), ()))


def _swiglu_body(x_ref, w1_ref, w3_ref, w2_ref, acc_ref, compute_dtype):
    """One (batch-tile, hidden-tile) step of the SwiGLU hidden reduction."""
    x = x_ref[...].astype(compute_dtype)        # (tb, dim)
    w1 = w1_ref[...].astype(compute_dtype)      # (th, dim)   nn.Linear layout
    w3 = w3_ref[...].astype(compute_dtype)      # (th, dim)
    w2 = w2_ref[...].astype(compute_dtype)      # (dim, th)
    h1 = lax.dot_general(x, w1, _DN_LAST, preferred_element_type=jnp.float32)
    h3 = lax.dot_general(x, w3, _DN_LAST, preferred_element_type=jnp.float32)
    gated = (h1 * jax.nn.sigmoid(h1)) * h3      # SiLU gate in f32 (EUP sigmoid)
    acc_ref[...] += lax.dot_general(
        gated.astype(compute_dtype), w2, _DN_LAST,
        preferred_element_type=jnp.float32)


def _kernel_f32_out(x_ref, w1_ref, w3_ref, w2_ref, out_ref, *, compute_dtype):
    """f32 output: accumulate the hidden-tile reduction directly into out_ref."""
    @pl.when(pl.program_id(1) == 0)
    def _():
        out_ref[...] = jnp.zeros_like(out_ref)

    _swiglu_body(x_ref, w1_ref, w3_ref, w2_ref, out_ref, compute_dtype)


def _kernel_lowp_out(x_ref, w1_ref, w3_ref, w2_ref, out_ref, acc_ref, *,
                     compute_dtype):
    """Non-f32 output: keep a resident f32 scratch accumulator."""
    @pl.when(pl.program_id(1) == 0)
    def _():
        acc_ref[...] = jnp.zeros_like(acc_ref)

    _swiglu_body(x_ref, w1_ref, w3_ref, w2_ref, acc_ref, compute_dtype)

    @pl.when(pl.program_id(1) == pl.num_programs(1) - 1)
    def _():
        out_ref[...] = acc_ref[...].astype(out_ref.dtype)


def _block_bytes(tb, th, dim, x_b, w_b, out_b, c_b, use_scratch):
    """VMEM working-set estimate for one grid step (incl. double buffering)."""
    b = 0
    b += 2 * tb * dim * x_b            # x tile, double-buffered
    b += 2 * 2 * th * dim * w_b        # w1 + w3 tiles, double-buffered
    b += 2 * dim * th * w_b            # w2 tile, double-buffered
    b += 2 * tb * dim * out_b          # out tile, double-buffered
    if use_scratch:
        b += tb * dim * 4              # resident f32 accumulator
    # Live intermediates inside a step:
    b += tb * dim * c_b                # x cast
    b += 3 * th * dim * c_b            # weight casts
    b += 3 * tb * th * 4               # h1, h3, gated (f32)
    b += tb * th * c_b                 # gated cast
    b += tb * dim * 4                  # partial second-matmul product (f32)
    return b


def _choose_tiles(B, dim, hidden, x_b, w_b, out_b, c_b, use_scratch, budget):
    """Pick (tile_b, tile_hidden).  Maximize tile_b first (arithmetic intensity
    ~ tile_b FLOP / weight byte), then tile_hidden, subject to the VMEM budget.
    """
    padded_hidden = _round_up(hidden, 128)
    th_cands = [t for t in (512, 256, 128) if padded_hidden % t == 0]
    tb_cap = min(512, _round_up(B, 8))
    tb_cands = [tb_cap] + [t for t in (512, 384, 256, 128, 64, 32, 16, 8)
                           if t < tb_cap]
    for tb in tb_cands:
        for th in th_cands:
            if _block_bytes(tb, th, dim, x_b, w_b, out_b, c_b,
                            use_scratch) <= budget:
                return tb, th
    return tb_cands[-1], th_cands[-1]   # tiny shapes always end up here safely


def training_mlp_forward(x, w1, w2, w3, *, compute_dtype=jnp.bfloat16,
                         tile_b=None, tile_hidden=None):
    """TrainingMLP forward (dropout p=0.0 path).

    x:  (B, dim)
    w1: (hidden, dim)   -- nn.Linear(dim, hidden).weight  (PyTorch (out, in))
    w2: (dim, hidden)   -- nn.Linear(hidden, dim).weight
    w3: (hidden, dim)   -- nn.Linear(dim, hidden).weight
    Matmuls run in `compute_dtype` (bf16, cast in-kernel) with f32
    accumulation; output keeps x.dtype.  No host-side weight repack.
    """
    B, dim = x.shape
    hidden, dim1 = w1.shape
    assert dim1 == dim and w3.shape == (hidden, dim) and w2.shape == (dim, hidden)
    out_dtype = x.dtype
    use_scratch = out_dtype != jnp.float32

    x_b = np.dtype(x.dtype).itemsize
    w_b = np.dtype(w1.dtype).itemsize
    out_b = np.dtype(out_dtype).itemsize
    c_b = np.dtype(compute_dtype).itemsize

    vmem_cap = _vmem_capacity_bytes()
    vmem_budget = int(0.85 * vmem_cap)

    auto_tb, auto_th = _choose_tiles(B, dim, hidden, x_b, w_b, out_b, c_b,
                                     use_scratch, vmem_budget)
    tb = int(tile_b) if tile_b is not None else auto_tb
    th = int(tile_hidden) if tile_hidden is not None else auto_th
    assert tb % 8 == 0 and th % 128 == 0, "tiles must be (8,128) aligned"

    # --- pad batch / hidden to the chosen tiles (zero pad is exact: silu(0)=0,
    #     padded W2 columns are zero, padded batch rows are sliced off) --------
    padded_B = _round_up(B, tb)
    padded_hidden = _round_up(hidden, th)
    xp = x if padded_B == B else jnp.pad(x, ((0, padded_B - B), (0, 0)))
    if padded_hidden != hidden:
        ph = padded_hidden - hidden
        w1 = jnp.pad(w1, ((0, ph), (0, 0)))
        w3 = jnp.pad(w3, ((0, ph), (0, 0)))
        w2 = jnp.pad(w2, ((0, 0), (0, ph)))
    nb, nh = padded_B // tb, padded_hidden // th

    kernel = functools.partial(
        _kernel_lowp_out if use_scratch else _kernel_f32_out,
        compute_dtype=compute_dtype)
    scratch = [pltpu.VMEM((tb, dim), jnp.float32)] if use_scratch else []

    block_bytes = _block_bytes(tb, th, dim, x_b, w_b, out_b, c_b, use_scratch)
    vmem_limit = min(int(0.9 * vmem_cap),
                     max(32 * 1024 * 1024, int(block_bytes * 3 // 2)))

    weight_bytes = (w1.size + w3.size + w2.size) * w_b
    cost = pl.CostEstimate(
        flops=6 * padded_B * dim * padded_hidden,      # 3 matmuls
        transcendentals=padded_B * padded_hidden,      # sigmoid
        bytes_accessed=(xp.size * x_b + padded_B * dim * out_b
                        + nb * weight_bytes),          # weights streamed nb times
    )

    out = pl.pallas_call(
        kernel,
        out_shape=jax.ShapeDtypeStruct((padded_B, dim), out_dtype),
        grid_spec=pltpu.PrefetchScalarGridSpec(
            num_scalar_prefetch=0,
            grid=(nb, nh),
            in_specs=[
                pl.BlockSpec((tb, dim), lambda i, h: (i, 0)),    # x
                pl.BlockSpec((th, dim), lambda i, h: (h, 0)),    # w1 (hidden, dim)
                pl.BlockSpec((th, dim), lambda i, h: (h, 0)),    # w3 (hidden, dim)
                pl.BlockSpec((dim, th), lambda i, h: (0, h)),    # w2 (dim, hidden)
            ],
            out_specs=pl.BlockSpec((tb, dim), lambda i, h: (i, 0)),
            scratch_shapes=scratch,
        ),
        compiler_params=pltpu.CompilerParams(
            dimension_semantics=("parallel", "arbitrary"),
            vmem_limit_bytes=int(vmem_limit),
        ),
        cost_estimate=cost,
    )(xp, w1, w3, w2)

    return out if padded_B == B else out[:B]


if __name__ == "__main__":
    # Small shapes consistent with the module: x is (batch, dim).
    B, DIM, HIDDEN = 16, 128, 256

    key = jax.random.PRNGKey(0)
    kx, k1, k2, k3 = jax.random.split(key, 4)

    x = jax.random.normal(kx, (B, DIM), dtype=jnp.float32)
    # nn.Linear weights are (out, in); trunc_normal(std=0.02) approximated with
    # plain normal * 0.02 (synthetic weights, no checkpoint).
    w1 = jax.random.normal(k1, (HIDDEN, DIM), dtype=jnp.float32) * 0.02  # w1.weight
    w2 = jax.random.normal(k2, (DIM, HIDDEN), dtype=jnp.float32) * 0.02  # w2.weight
    w3 = jax.random.normal(k3, (HIDDEN, DIM), dtype=jnp.float32) * 0.02  # w3.weight

    out = training_mlp_forward(x, w1, w2, w3)
    out = jax.block_until_ready(out)

    # Pure-JAX reference of the PyTorch forward (dropout p=0.0 is identity),
    # using the same bf16 matmul inputs / f32 accumulation as the kernel.
    xc, w1c, w2c, w3c = (a.astype(jnp.bfloat16) for a in (x, w1, w2, w3))
    h1 = jnp.dot(xc, w1c.T, preferred_element_type=jnp.float32)
    h3 = jnp.dot(xc, w3c.T, preferred_element_type=jnp.float32)
    gated = (jax.nn.silu(h1) * h3).astype(jnp.bfloat16)
    ref = jnp.dot(gated, w2c.T, preferred_element_type=jnp.float32).astype(x.dtype)

    err = jnp.max(jnp.abs(out - ref))
    assert jnp.allclose(out, ref, atol=1e-4, rtol=1e-2), f"max abs err {err}"

    print("KERNEL_OK")
</pallas_src>

<mosaic_0001>
module attributes {stable_mosaic.version = 11 : i64} {
  func.func @_kernel_f32_out(%arg0: i32, %arg1: i32, %arg2: memref<16x128xf32, #tpu.memory_space<vmem>>, %arg3: memref<256x128xf32, #tpu.memory_space<vmem>>, %arg4: memref<256x128xf32, #tpu.memory_space<vmem>>, %arg5: memref<128x256xf32, #tpu.memory_space<vmem>>, %arg6: memref<16x128xf32, #tpu.memory_space<vmem>>) attributes {dimension_semantics = [#tpu.dimension_semantics<parallel>, #tpu.dimension_semantics<arbitrary>], iteration_bounds = array<i64: 1, 1>, scalar_prefetch = 0 : i64, scratch_operands = 0 : i64, tpu.core_type = #tpu.core_type<tc>, window_params = [{transform_indices = @transform_0, window_bounds = array<i64: 16, 128>}, {transform_indices = @transform_1, window_bounds = array<i64: 256, 128>}, {transform_indices = @transform_2, window_bounds = array<i64: 256, 128>}, {transform_indices = @transform_3, window_bounds = array<i64: 128, 256>}, {transform_indices = @transform_4, window_bounds = array<i64: 16, 128>}]} {
    %c0_i32 = arith.constant 0 : i32
    %0 = arith.cmpi eq, %arg1, %c0_i32 : i32
    %1 = arith.extui %0 : i1 to i32
    %c0_i32_0 = arith.constant 0 : i32
    %2 = arith.cmpi ne, %1, %c0_i32_0 : i32
    scf.if %2 {
      %cst_15 = arith.constant 0.000000e+00 : f32
      %25 = vector.broadcast %cst_15 : f32 to vector<16x128xf32>
      %c0_16 = arith.constant 0 : index
      %c0_17 = arith.constant 0 : index
      %26 = vector.load %arg6[%c0_16, %c0_17] : memref<16x128xf32, #tpu.memory_space<vmem>>, vector<16x128xf32>
      tpu.vector_store %arg6[%c0_16, %c0_17], %25 {strides = array<i32>} : memref<16x128xf32, #tpu.memory_space<vmem>>, vector<16x128xf32>,
    } else {
    }
    %c0 = arith.constant 0 : index
    %c0_1 = arith.constant 0 : index
    %3 = vector.load %arg2[%c0, %c0_1] : memref<16x128xf32, #tpu.memory_space<vmem>>, vector<16x128xf32>
    %4 = arith.truncf %3 : vector<16x128xf32> to vector<16x128xbf16>
    %c0_2 = arith.constant 0 : index
    %c0_3 = arith.constant 0 : index
    %5 = vector.load %arg3[%c0_2, %c0_3] : memref<256x128xf32, #tpu.memory_space<vmem>>, vector<256x128xf32>
    %6 = arith.truncf %5 : vector<256x128xf32> to vector<256x128xbf16>
    %c0_4 = arith.constant 0 : index
    %c0_5 = arith.constant 0 : index
    %7 = vector.load %arg4[%c0_4, %c0_5] : memref<256x128xf32, #tpu.memory_space<vmem>>, vector<256x128xf32>
    %8 = arith.truncf %7 : vector<256x128xf32> to vector<256x128xbf16>
    %c0_6 = arith.constant 0 : index
    %c0_7 = arith.constant 0 : index
    %9 = vector.load %arg5[%c0_6, %c0_7] : memref<128x256xf32, #tpu.memory_space<vmem>>, vector<128x256xf32>
    %10 = arith.truncf %9 : vector<128x256xf32> to vector<128x256xbf16>
    %cst = arith.constant dense<0.000000e+00> : vector<16x256xf32>
    %11 = tpu.matmul %4, %6, %cst {dimension_numbers = #tpu.dot_dimension_numbers<[1], [1], [0], [0], [0, 0, 1, 0], [], []>} : vector<16x128xbf16>, vector<256x128xbf16>, vector<16x256xf32> -> vector<16x256xf32>
    %cst_8 = arith.constant dense<0.000000e+00> : vector<16x256xf32>
    %12 = tpu.matmul %4, %8, %cst_8 {dimension_numbers = #tpu.dot_dimension_numbers<[1], [1], [0], [0], [0, 0, 1, 0], [], []>} : vector<16x128xbf16>, vector<256x128xbf16>, vector<16x256xf32> -> vector<16x256xf32>
    %13 = arith.negf %11 : vector<16x256xf32>
    %14 = math.exp %13 : vector<16x256xf32>
    %cst_9 = arith.constant 1.000000e+00 : f32
    %15 = vector.broadcast %cst_9 : f32 to vector<16x256xf32>
    %16 = arith.addf %15, %14 : vector<16x256xf32>
    %17 = arith.divf %15, %16 : vector<16x256xf32>
    %18 = arith.mulf %11, %17 : vector<16x256xf32>
    %19 = arith.mulf %18, %12 : vector<16x256xf32>
    %c0_10 = arith.constant 0 : index
    %c0_11 = arith.constant 0 : index
    %20 = vector.load %arg6[%c0_10, %c0_11] : memref<16x128xf32, #tpu.memory_space<vmem>>, vector<16x128xf32>
    %21 = arith.truncf %19 : vector<16x256xf32> to vector<16x256xbf16>
    %cst_12 = arith.constant dense<0.000000e+00> : vector<16x128xf32>
    %22 = tpu.matmul %21, %10, %cst_12 {dimension_numbers = #tpu.dot_dimension_numbers<[1], [1], [0], [0], [0, 0, 1, 0], [], []>} : vector<16x256xbf16>, vector<128x256xbf16>, vector<16x128xf32> -> vector<16x128xf32>
    %23 = arith.addf %20, %22 : vector<16x128xf32>
    %c0_13 = arith.constant 0 : index
    %c0_14 = arith.constant 0 : index
    %24 = vector.load %arg6[%c0_13, %c0_14] : memref<16x128xf32, #tpu.memory_space<vmem>>, vector<16x128xf32>
    tpu.vector_store %arg6[%c0_13, %c0_14], %23 {strides = array<i32>} : memref<16x128xf32, #tpu.memory_space<vmem>>, vector<16x128xf32>,
    return
  }
  func.func @transform_0(%arg0: i32, %arg1: i32) -> (i32, i32) {
    %c0_i32 = arith.constant 0 : i32
    %c0_i32_0 = arith.constant 0 : i32
    return %arg0, %c0_i32 : i32, i32
  }
  func.func @transform_1(%arg0: i32, %arg1: i32) -> (i32, i32) {
    %c0_i32 = arith.constant 0 : i32
    %c0_i32_0 = arith.constant 0 : i32
    return %arg1, %c0_i32 : i32, i32
  }
  func.func @transform_2(%arg0: i32, %arg1: i32) -> (i32, i32) {
    %c0_i32 = arith.constant 0 : i32
    %c0_i32_0 = arith.constant 0 : i32
    return %arg1, %c0_i32 : i32, i32
  }
  func.func @transform_3(%arg0: i32, %arg1: i32) -> (i32, i32) {
    %c0_i32 = arith.constant 0 : i32
    %c0_i32_0 = arith.constant 0 : i32
    return %c0_i32, %arg1 : i32, i32
  }
  func.func @transform_4(%arg0: i32, %arg1: i32) -> (i32, i32) {
    %c0_i32 = arith.constant 0 : i32
    %c0_i32_0 = arith.constant 0 : i32
    return %arg0, %c0_i32 : i32, i32
  }
}

</mosaic_0001>

<bundles_post_ra>
// kernel: tpu_custom_call.1
= control target key start
LH: loop header
LB: loop body
LE: loop exit
PB: predicated region body
PF: predicated region fallthrough
CT: control target
= control target key end

     0   :  { %9 = vsyncpa [#allocation3], 0  ;;  %s723_s0 = inlined_call_operand.hbm [shape: f32[16,128], index: 0, kind: input, shape index: {}]   ;;  %s724_s1 = inlined_call_operand.hbm [shape: f32[256,128], index: 1, kind: input, shape index: {}]   ;;  %s725_s2 = inlined_call_operand.hbm [shape: f32[256,128], index: 2, kind: input, shape index: {}]   ;;  %s726_s3 = inlined_call_operand.hbm [shape: f32[128,256], index: 3, kind: input, shape index: {}]   ;;  %s727_s4 = inlined_call_operand.hbm [shape: f32[16,128], index: 4, kind: output, shape index: {}]  }
   0x1   :  { %10 = vsyncpa [#allocation6], 0 }
   0x2   :  { %11 = vsyncpa [#allocation9], 0 }
   0x3   :  { %12 = vsyncpa [#allocation4], 0  ;;  %s597_s15 = smov [#allocation5]   ;;  %s598_s17 = smov [#allocation2]  }
   0x4   :  { %s30_s16 = sshll.u32 %s597_s15, 4  ;;  %s18_s18 = sshll.u32 %s598_s17, 4  ;;  %s31_s16 = int_to_ptr.vmem [resolvable:$true] %s30_s16  ;;  %s631_s18 = int_to_ptr.vmem [resolvable:$true] %s18_s18 }
   0x5   :  { %s479_s21 = scalar_lea.hbm %s724_s1, 4096 }
   0x6   :  { %p480_p0 = scmp.ne.s32.totalorder %s724_s1, %s479_s21  ;;  %p483_p1 = scmp.lt.u32.totalorder %s479_s21, %s724_s1 }
   0x8   :  { %p485_p2 = pnand %p483_p1, %p480_p0 }
   0xa   :  { %488 = shalt.err (!%p485_p2)
}
   0xb   :  { %s489_s26 = scalar_lea.vmem %s31_s16, 4096  ;;  %p494_p4 = scmp.lt.s32.totalorder %s31_s16, %s31_s16 }
   0xc   :  { %p490_p3 = scmp.ne.s32.totalorder %s31_s16, %s489_s26  ;;  %p495_p5 = scmp.lt.s32.totalorder %s489_s26, %s489_s26 }
   0xe   :  { %p496_p6 = por %p495_p5, %p494_p4 }
  0x10   :  { %p497_p7 = pnand %p496_p6, %p490_p3 }
  0x12   :  { %500 = shalt.err (!%p497_p7)
}
  0x13   :  { %s599_s27 = smov 128   ;;  %s600_s28 = smov 8  }
  0x14   :  { %36 = dma.hbm_to_vmem [thread:$0]  %s724_s1, 4096, %s31_s16, [#allocation6], %s599_s27, %s599_s27, %s600_s28  }
  0x15   :  { %s501_s7 = scalar_lea.hbm %s723_s0, 256 }
  0x16   :  { %p502_p8 = scmp.ne.s32.totalorder %s723_s0, %s501_s7  ;;  %p505_p9 = scmp.lt.u32.totalorder %s501_s7, %s723_s0 }
  0x18   :  { %p507_p10 = pnand %p505_p9, %p502_p8 }
  0x1a   :  { %510 = shalt.err (!%p507_p10)
}
  0x1b   :  { %s511_s12 = scalar_lea.vmem %s631_s18, 256  ;;  %p516_p12 = scmp.lt.s32.totalorder %s631_s18, %s631_s18 }
  0x1c   :  { %p512_p11 = scmp.ne.s32.totalorder %s631_s18, %s511_s12  ;;  %p517_p13 = scmp.lt.s32.totalorder %s511_s12, %s511_s12 }
  0x1e   :  { %p518_p0 = por %p517_p13, %p516_p12 }
  0x20   :  { %p519_p1 = pnand %p518_p0, %p512_p11 }
  0x22   :  { %522 = shalt.err (!%p519_p1)
}
  0x23   :  { %24 = dma.hbm_to_vmem [thread:$0]  %s723_s0, 256, %s631_s18, [#allocation3], %s599_s27, %s599_s27, %s600_s28  }
  0x24   :  { %s601_s14 = smov [#allocation7]   ;;  %s602_s16 = smov [#allocation8]  }
  0x25   :  { %s42_s15 = sshll.u32 %s601_s14, 4  ;;  %s54_s17 = sshll.u32 %s602_s16, 4  ;;  %s43_s15 = int_to_ptr.vmem [resolvable:$true] %s42_s15  ;;  %s668_s17 = int_to_ptr.vmem [resolvable:$true] %s54_s17 }
  0x26   :  { %s523_s21 = scalar_lea.hbm %s725_s2, 4096 }
  0x27   :  { %p524_p2 = scmp.ne.s32.totalorder %s725_s2, %s523_s21  ;;  %p527_p3 = scmp.lt.u32.totalorder %s523_s21, %s725_s2 }
  0x29   :  { %p529_p4 = pnand %p527_p3, %p524_p2 }
  0x2b   :  { %532 = shalt.err (!%p529_p4)
}
  0x2c   :  { %s533_s0 = scalar_lea.vmem %s43_s15, 4096  ;;  %p538_p6 = scmp.lt.s32.totalorder %s43_s15, %s43_s15 }
  0x2d   :  { %p534_p5 = scmp.ne.s32.totalorder %s43_s15, %s533_s0  ;;  %p539_p7 = scmp.lt.s32.totalorder %s533_s0, %s533_s0 }
  0x2f   :  { %p540_p8 = por %p539_p7, %p538_p6 }
  0x31   :  { %p541_p9 = pnand %p540_p8, %p534_p5 }
  0x33   :  { %544 = shalt.err (!%p541_p9)
}
  0x34   :  { %48 = dma.hbm_to_vmem [thread:$0]  %s725_s2, 4096, %s43_s15, [#allocation6], %s599_s27, %s599_s27, %s600_s28  }
  0x35   :  { %s545_s5 = scalar_lea.hbm %s726_s3, 4096 }
  0x36   :  { %p546_p10 = scmp.ne.s32.totalorder %s726_s3, %s545_s5  ;;  %p549_p11 = scmp.lt.u32.totalorder %s545_s5, %s726_s3 }
  0x38   :  { %p551_p12 = pnand %p549_p11, %p546_p10 }
  0x3a   :  { %554 = shalt.err (!%p551_p12)
}
  0x3b   :  { %s555_s10 = scalar_lea.vmem %s668_s17, 4096  ;;  %p560_p0 = scmp.lt.s32.totalorder %s668_s17, %s668_s17 }
  0x3c   :  { %p556_p13 = scmp.ne.s32.totalorder %s668_s17, %s555_s10  ;;  %p561_p1 = scmp.lt.s32.totalorder %s555_s10, %s555_s10 }
  0x3e   :  { %p562_p2 = por %p561_p1, %p560_p0 }
  0x40   :  { %p563_p3 = pnand %p562_p2, %p556_p13 }
  0x42   :  { %566 = shalt.err (!%p563_p3)
}
  0x43   :  { %s603_s2 = smov 256   ;;  %s604_s11 = smov 16  }
  0x44   :  { %60 = dma.hbm_to_vmem [thread:$0]  %s726_s3, 4096, %s668_s17, [#allocation9], %s603_s2, %s603_s2, %s604_s11  }
  0x45   :  { %589 = dma.done.wait [#allocation3], 256  }
  0x46   :  { %590 = vsyncadd [#allocation3], 4294967040 }
  0x47   :  { %591 = dma.done.wait [#allocation6], 8192  }
  0x48   :  { %592 = vsyncadd [#allocation6], 4294959104 }
  0x49   :  { %593 = dma.done.wait [#allocation9], 4096  }
  0x4a   :  { %594 = vsyncadd [#allocation9], 4294963200  ;;  %v99_v0 = vld [vmem:[#allocation5 + $0x80] sm:$0xff]  ;;  %v100_v1 = vld [vmem:[#allocation5 + $0x88] sm:$0xff]  ;;  %s605_s3 = smov [#allocation10]  }
  0x4b   :  { %v83_v2 = vld [vmem:[#allocation5] sm:$0xff]  ;;  %v123_v3 = vpack.c.bf16 %v100_v1, %v99_v0  ;;  %v84_v4 = vld [vmem:[#allocation5 + $0x8] sm:$0xff]  ;;  %v101_v5 = vld [vmem:[#allocation5 + $0x90] sm:$0xff]  ;;  %s399_s13 = sshll.u32 %s605_s3, 4  ;;  %s400_s13 = int_to_ptr.vmem [resolvable:$true] %s399_s13 }
  0x4c   :  { %v102_v6 = vld [vmem:[#allocation5 + $0x98] sm:$0xff]  ;;  %v115_v7 = vpack.c.bf16 %v84_v4, %v83_v2  ;;  %v85_v9 = vld [vmem:[#allocation5 + $0x10] sm:$0xff]  ;;  %v103_v11 = vld [vmem:[#allocation5 + $0xa0] sm:$0xff]  ;;  %s567_s14 = scalar_lea.vmem %s400_s13, 256  ;;  %p572_p5 = scmp.lt.s32.totalorder %s400_s13, %s400_s13 }
  0x4d   :  { %v124_v8 = vpack.c.bf16 %v102_v6, %v101_v5  ;;  %417 = vmatprep.subr.bf16.mxu0 %v123_v3  ;;  %v86_v10 = vld [vmem:[#allocation5 + $0x18] sm:$0xff]  ;;  %v147_v12 = vld [vmem:[#allocation7 + $0x80] sm:$0xff]  ;;  %v148_v13 = vld [vmem:[#allocation7 + $0x88] sm:$0xff]  ;;  %p568_p4 = scmp.ne.s32.totalorder %s400_s13, %s567_s14  ;;  %p573_p6 = scmp.lt.s32.totalorder %s567_s14, %s567_s14 }
  0x4e   :  { %418 = vmatpush3.bf16.xpose.msra.mxu0 %v115_v7  ;;  %v104_v14 = vld [vmem:[#allocation5 + $0xa8] sm:$0xff]  ;;  %v171_v15 = vpack.c.bf16 %v148_v13, %v147_v12  ;;  %v131_v16 = vld [vmem:[#allocation7] sm:$0xff]  ;;  %v116_v19 = vpack.c.bf16 %v86_v10, %v85_v9  ;;  %v149_v20 = vld [vmem:[#allocation7 + $0x90] sm:$0xff] }
  0x4f   :  { %419 = vmatprep.subr.bf16.mxu0 %v124_v8  ;;  %v132_v17 = vld [vmem:[#allocation7 + $0x8] sm:$0xff]  ;;  %v150_v21 = vld [vmem:[#allocation7 + $0x98] sm:$0xff]  ;;  %v125_v22 = vpack.c.bf16 %v104_v14, %v103_v11  ;;  %v133_v24 = vld [vmem:[#allocation7 + $0x10] sm:$0xff]  ;;  %p574_p7 = por %p573_p6, %p572_p5 }
  0x50   :  { %v163_v18 = vpack.c.bf16 %v132_v17, %v131_v16  ;;  %435 = vmatprep.subr.bf16.mxu1 %v171_v15  ;;  %v172_v23 = vpack.c.bf16 %v150_v21, %v149_v20  ;;  %v134_v25 = vld [vmem:[#allocation7 + $0x18] sm:$0xff]  ;;  %v151_v26 = vld [vmem:[#allocation7 + $0xa0] sm:$0xff]  ;;  %v152_v27 = vld [vmem:[#allocation7 + $0xa8] sm:$0xff] }
  0x51   :  { %v87_v28 = vld [vmem:[#allocation5 + $0x20] sm:$0xff]  ;;  %v88_v29 = vld [vmem:[#allocation5 + $0x28] sm:$0xff]  ;;  %v164_v30 = vpack.c.bf16 %v134_v25, %v133_v24  ;;  %v105_v31 = vld [vmem:[#allocation5 + $0xb0] sm:$0xff]  ;;  %v173_v33 = vpack.c.bf16 %v152_v27, %v151_v26  ;;  %p575_p8 = pnand %p574_p7, %p568_p4 }
  0x52   :  { %436 = vmatpush3.bf16.xpose.msra.mxu1 %v163_v18  ;;  %v106_v32 = vld [vmem:[#allocation5 + $0xb8] sm:$0xff]  ;;  %v117_v34 = vpack.c.bf16 %v88_v29, %v87_v28  ;;  %v80_v36 = vld [vmem:[#allocation2] sm:$0xff]  ;;  %v135_v38 = vld [vmem:[#allocation7 + $0x20] sm:$0xff] }
  0x53   :  { %437 = vmatprep.subr.bf16.mxu1 %v172_v23  ;;  %v126_v35 = vpack.c.bf16 %v106_v32, %v105_v31  ;;  %v81_v37 = vld [vmem:[#allocation2 + $0x8] sm:$0xff]  ;;  %v136_v39 = vld [vmem:[#allocation7 + $0x28] sm:$0xff]  ;;  %v153_v41 = vld [vmem:[#allocation7 + $0xb0] sm:$0xff] }
  0x54   :  { %v702_v40 = vpack.c.bf16 %v81_v37, %v80_v36  ;;  %v154_v42 = vld [vmem:[#allocation7 + $0xb8] sm:$0xff]  ;;  %v89_v43 = vld [vmem:[#allocation5 + $0x30] sm:$0xff]  ;;  %v165_v45 = vpack.c.bf16 %v136_v39, %v135_v38  ;;  %v107_v46 = vld [vmem:[#allocation5 + $0xc0] sm:$0xff] }
  0x55   :  { %v90_v44 = vld [vmem:[#allocation5 + $0x38] sm:$0xff]  ;;  %v108_v47 = vld [vmem:[#allocation5 + $0xc8] sm:$0xff]  ;;  %v174_v48 = vpack.c.bf16 %v154_v42, %v153_v41  ;;  %v137_v51 = vld [vmem:[#allocation7 + $0x30] sm:$0xff] }
  0x56   :  { %420 = vmatpush3.bf16.xpose.msra.mxu0 %v116_v19  ;;  %433 = vmatprep.mubr.bf16.mxu0 %v702_v40  ;;  %v118_v49 = vpack.c.bf16 %v90_v44, %v89_v43  ;;  %v127_v50 = vpack.c.bf16 %v108_v47, %v107_v46  ;;  %v138_v52 = vld [vmem:[#allocation7 + $0x38] sm:$0xff]  ;;  %v155_v53 = vld [vmem:[#allocation7 + $0xc0] sm:$0xff]  ;;  %v156_v54 = vld [vmem:[#allocation7 + $0xc8] sm:$0xff] }
  0x57   :  { %421 = vmatprep.subr.bf16.mxu0 %v125_v22  ;;  %451 = vmatprep.mubr.bf16.mxu1 %v702_v40  ;;  %v91_v55 = vld [vmem:[#allocation5 + $0x40] sm:$0xff]  ;;  %v92_v56 = vld [vmem:[#allocation5 + $0x48] sm:$0xff]  ;;  %v166_v57 = vpack.c.bf16 %v138_v52, %v137_v51  ;;  %v109_v58 = vld [vmem:[#allocation5 + $0xd0] sm:$0xff]  ;;  %v175_v60 = vpack.c.bf16 %v156_v54, %v155_v53 }
  0x58   :  { %v110_v59 = vld [vmem:[#allocation5 + $0xd8] sm:$0xff]  ;;  %v119_v61 = vpack.c.bf16 %v92_v56, %v91_v55  ;;  %v139_v63 = vld [vmem:[#allocation7 + $0x40] sm:$0xff]  ;;  %v140_v0 = vld [vmem:[#allocation7 + $0x48] sm:$0xff] }
  0x59   :  { %v128_v62 = vpack.c.bf16 %v110_v59, %v109_v58  ;;  %v157_v1 = vld [vmem:[#allocation7 + $0xd0] sm:$0xff]  ;;  %v158_v2 = vld [vmem:[#allocation7 + $0xd8] sm:$0xff]  ;;  %v167_v5 = vpack.c.bf16 %v140_v0, %v139_v63  ;;  %v111_v6 = vld [vmem:[#allocation5 + $0xe0] sm:$0xff] }
  0x5a   :  { %438 = vmatpush3.bf16.xpose.msra.mxu1 %v164_v30  ;;  %v93_v3 = vld [vmem:[#allocation5 + $0x50] sm:$0xff]  ;;  %v94_v4 = vld [vmem:[#allocation5 + $0x58] sm:$0xff]  ;;  %v112_v7 = vld [vmem:[#allocation5 + $0xe8] sm:$0xff]  ;;  %v176_v8 = vpack.c.bf16 %v158_v2, %v157_v1 }
  0x5b   :  { %439 = vmatprep.subr.bf16.mxu1 %v173_v33  ;;  %v120_v9 = vpack.c.bf16 %v94_v4, %v93_v3  ;;  %v129_v10 = vpack.c.bf16 %v112_v7, %v111_v6  ;;  %v141_v11 = vld [vmem:[#allocation7 + $0x50] sm:$0xff]  ;;  %v142_v12 = vld [vmem:[#allocation7 + $0x58] sm:$0xff]  ;;  %v159_v13 = vld [vmem:[#allocation7 + $0xe0] sm:$0xff] }
  0x5c   :  { %v160_v14 = vld [vmem:[#allocation7 + $0xe8] sm:$0xff]  ;;  %v95_v15 = vld [vmem:[#allocation5 + $0x60] sm:$0xff]  ;;  %v168_v17 = vpack.c.bf16 %v142_v12, %v141_v11  ;;  %v113_v18 = vld [vmem:[#allocation5 + $0xf0] sm:$0xff] }
  0x5d   :  { %v96_v16 = vld [vmem:[#allocation5 + $0x68] sm:$0xff]  ;;  %v114_v19 = vld [vmem:[#allocation5 + $0xf8] sm:$0xff]  ;;  %v177_v20 = vpack.c.bf16 %v160_v14, %v159_v13  ;;  %v143_v23 = vld [vmem:[#allocation7 + $0x60] sm:$0xff] }
  0x5e   :  { %422 = vmatpush3.bf16.xpose.msra.mxu0 %v117_v34  ;;  %v121_v21 = vpack.c.bf16 %v96_v16, %v95_v15  ;;  %v130_v22 = vpack.c.bf16 %v114_v19, %v113_v18  ;;  %v144_v24 = vld [vmem:[#allocation7 + $0x68] sm:$0xff]  ;;  %v161_v25 = vld [vmem:[#allocation7 + $0xf0] sm:$0xff]  ;;  %v162_v26 = vld [vmem:[#allocation7 + $0xf8] sm:$0xff] }
  0x5f   :  { %423 = vmatprep.subr.bf16.mxu0 %v126_v35  ;;  %v97_v27 = vld [vmem:[#allocation5 + $0x70] sm:$0xff]  ;;  %v98_v28 = vld [vmem:[#allocation5 + $0x78] sm:$0xff]  ;;  %v169_v29 = vpack.c.bf16 %v144_v24, %v143_v23  ;;  %v178_v30 = vpack.c.bf16 %v162_v26, %v161_v25  ;;  %v180_v31 = vld [vmem:[#allocation8 + $0x8] sm:$0xff] }
  0x60   :  { %v182_v32 = vld [vmem:[#allocation8 + $0x18] sm:$0xff]  ;;  %v122_v33 = vpack.c.bf16 %v98_v28, %v97_v27  ;;  %v145_v35 = vld [vmem:[#allocation7 + $0x70] sm:$0xff]  ;;  %v179_v38 = vld [vmem:[#allocation8] sm:$0xff] }
  0x61   :  { %v212_v34 = vpack.c.bf16 %v182_v32, %v180_v31  ;;  %v146_v36 = vld [vmem:[#allocation7 + $0x78] sm:$0xff]  ;;  %v181_v39 = vld [vmem:[#allocation8 + $0x10] sm:$0xff]  ;;  %v184_v41 = vld [vmem:[#allocation8 + $0x28] sm:$0xff] }
  0x62   :  { %440 = vmatpush3.bf16.xpose.msra.mxu1 %v165_v45  ;;  %v170_v37 = vpack.c.bf16 %v146_v36, %v145_v35  ;;  %v186_v42 = vld [vmem:[#allocation8 + $0x38] sm:$0xff]  ;;  %v211_v43 = vpack.c.bf16 %v181_v39, %v179_v38  ;;  %v183_v45 = vld [vmem:[#allocation8 + $0x20] sm:$0xff]  ;;  %v185_v46 = vld [vmem:[#allocation8 + $0x30] sm:$0xff] }
  0x63   :  { %441 = vmatprep.subr.bf16.mxu1 %v174_v48  ;;  %v214_v44 = vpack.c.bf16 %v186_v42, %v184_v41  ;;  %v188_v47 = vld [vmem:[#allocation8 + $0x48] sm:$0xff]  ;;  %v190_v48 = vld [vmem:[#allocation8 + $0x58] sm:$0xff]  ;;  %v187_v51 = vld [vmem:[#allocation8 + $0x40] sm:$0xff] }
  0x64   :  { %v189_v52 = vld [vmem:[#allocation8 + $0x50] sm:$0xff]  ;;  %v192_v53 = vld [vmem:[#allocation8 + $0x68] sm:$0xff]  ;;  %v194_v54 = vld [vmem:[#allocation8 + $0x78] sm:$0xff] }
  0x65   :  { %v215_v55 = vpack.c.bf16 %v189_v52, %v187_v51  ;;  %v218_v56 = vpack.c.bf16 %v194_v54, %v192_v53  ;;  %v193_v58 = vld [vmem:[#allocation8 + $0x70] sm:$0xff]  ;;  %v200_v1 = vld [vmem:[#allocation8 + $0xa8] sm:$0xff]  ;;  %v202_v2 = vld [vmem:[#allocation8 + $0xb8] sm:$0xff] }
  0x66   :  { %424 = vmatpush3.bf16.xpose.msra.mxu0 %v118_v49  ;;  %v213_v49 = vpack.c.bf16 %v185_v46, %v183_v45  ;;  %v197_v63 = vld [vmem:[#allocation8 + $0x90] sm:$0xff]  ;;  %v222_v3 = vpack.c.bf16 %v202_v2, %v200_v1  ;;  %v199_v4 = vld [vmem:[#allocation8 + $0xa0] sm:$0xff]  ;;  %v204_v7 = vld [vmem:[#allocation8 + $0xc8] sm:$0xff] }
  0x67   :  { %425 = vmatprep.subr.bf16.mxu0 %v127_v50  ;;  %v216_v50 = vpack.c.bf16 %v190_v48, %v188_v47  ;;  %v205_v11 = vld [vmem:[#allocation8 + $0xd0] sm:$0xff]  ;;  %v208_v13 = vld [vmem:[#allocation8 + $0xe8] sm:$0xff]  ;;  %v210_v14 = vld [vmem:[#allocation8 + $0xf8] sm:$0xff] }
  0x68   :  { %v226_v15 = vpack.c.bf16 %v210_v14, %v208_v13  ;;  %v207_v16 = vld [vmem:[#allocation8 + $0xe0] sm:$0xff] }
  0x6a   :  { %442 = vmatpush3.bf16.xpose.msra.mxu1 %v166_v57  ;;  %v191_v57 = vld [vmem:[#allocation8 + $0x60] sm:$0xff] }
  0x6b   :  { %443 = vmatprep.subr.bf16.mxu1 %v175_v60  ;;  %v217_v59 = vpack.c.bf16 %v193_v58, %v191_v57  ;;  %v196_v60 = vld [vmem:[#allocation8 + $0x88] sm:$0xff] }
  0x6e   :  { %426 = vmatpush3.bf16.xpose.msra.mxu0 %v119_v61  ;;  %v198_v61 = vld [vmem:[#allocation8 + $0x98] sm:$0xff] }
  0x6f   :  { %427 = vmatprep.subr.bf16.mxu0 %v128_v62  ;;  %v220_v62 = vpack.c.bf16 %v198_v61, %v196_v60 }
  0x72   :  { %444 = vmatpush3.bf16.xpose.msra.mxu1 %v167_v5  ;;  %v201_v5 = vld [vmem:[#allocation8 + $0xb0] sm:$0xff] }
  0x73   :  { %445 = vmatprep.subr.bf16.mxu1 %v176_v8  ;;  %v221_v6 = vpack.c.bf16 %v201_v5, %v199_v4  ;;  %v206_v8 = vld [vmem:[#allocation8 + $0xd8] sm:$0xff] }
  0x76   :  { %428 = vmatpush3.bf16.xpose.msra.mxu0 %v120_v9  ;;  %v224_v9 = vpack.c.bf16 %v206_v8, %v204_v7 }
  0x77   :  { %429 = vmatprep.subr.bf16.mxu0 %v129_v10  ;;  %v203_v10 = vld [vmem:[#allocation8 + $0xc0] sm:$0xff] }
  0x78   :  { %v223_v12 = vpack.c.bf16 %v205_v11, %v203_v10 }
  0x7a   :  { %446 = vmatpush3.bf16.xpose.msra.mxu1 %v168_v17  ;;  %v209_v17 = vld [vmem:[#allocation8 + $0xf0] sm:$0xff] }
  0x7b   :  { %447 = vmatprep.subr.bf16.mxu1 %v177_v20  ;;  %v225_v18 = vpack.c.bf16 %v209_v17, %v207_v16 }
  0x7e   :  { %430 = vmatpush3.bf16.xpose.msra.mxu0 %v121_v21 }
  0x7f   :  { %431 = vmatprep.subr.bf16.mxu0 %v130_v22 }
  0x82   :  { %448 = vmatpush3.bf16.xpose.msra.mxu1 %v169_v29 }
  0x83   :  { %449 = vmatprep.subr.bf16.mxu1 %v178_v30 }
  0x86   :  { %432 = vmatpush3.bf16.xpose.msra.mxu0 %v122_v33 }
  0x87   :  { %349 = vmatprep.subr.bf16.mxu0 %v212_v34 }
  0x8a   :  { %450 = vmatpush3.bf16.xpose.msra.mxu1 %v170_v37 }
  0x8d   :  { %434 = vmatmul.mubr.bf16.vlgmr.msra.gmra.mrb[0].mxu0 %v702_v40 }
  0x8e   :  { %350 = vmatpush1.bf16.xpose.msra.mxu0 %v211_v43 }
  0x8f   :  { %351 = vmatprep.subr.bf16.mxu0 %v214_v44 }
  0x91   :  { %452 = vmatmul.mubr.bf16.vlgmr.msra.gmra.mrb[0].mxu1 %v702_v40  ;;  %v195_v40 = vld [vmem:[#allocation8 + $0x80] sm:$0xff] }
  0x92   :  { %v219_v0 = vpack.c.bf16 %v197_v63, %v195_v40 }
  0x96   :  { %352 = vmatpush1.bf16.xpose.msra.mxu0 %v213_v49 }
  0x97   :  { %353 = vmatprep.subr.bf16.mxu0 %v216_v50 }
  0x9e   :  { %354 = vmatpush1.bf16.xpose.msra.mxu0 %v215_v55 }
  0x9f   :  { %355 = vmatprep.subr.bf16.mxu0 %v218_v56 }
  0xa6   :  { %356 = vmatpush1.bf16.xpose.msra.mxu0 %v217_v59 }
  0xa7   :  { %357 = vmatprep.subr.bf16.mxu0 %v220_v62 }
  0xae   :  { %358 = vmatpush1.bf16.xpose.msra.mxu0 %v219_v0 }
  0xaf   :  { %359 = vmatprep.subr.bf16.mxu0 %v222_v3 }
  0xb6   :  { %360 = vmatpush1.bf16.xpose.msra.mxu0 %v221_v6 }
  0xb7   :  { %361 = vmatprep.subr.bf16.mxu0 %v224_v9 }
  0xbe   :  { %362 = vmatpush1.bf16.xpose.msra.mxu0 %v223_v12 }
  0xbf   :  { %363 = vmatprep.subr.bf16.mxu0 %v226_v15 }
  0xc6   :  { %364 = vmatpush1.bf16.xpose.msra.mxu0 %v225_v18 }
 0x160   :  { %v261_v19 = vpop.f32.mrb[0].mxu0 }
 0x161   :  { %v413_v20 = vmul.f32 -1.442695, %v261_v19  ;;  %v263_v21 = vpop.f32.mrb[1].mxu0 }
 0x162   :  { %v414_v22 = vmul.f32 -1.442695, %v263_v21  ;;  %v265_v23 = vpop.f32.mrb[2].mxu0 }
 0x163   :  { %463 = vpow2.f32 %v413_v20  ;;  %v415_v24 = vmul.f32 -1.442695, %v265_v23  ;;  %v267_v25 = vpop.f32.mrb[3].mxu0 }
 0x164   :  { %465 = vpow2.f32 %v414_v22  ;;  %v416_v26 = vmul.f32 -1.442695, %v267_v25  ;;  %v304_v27 = vpop.f32.mrb[0].mxu1 }
 0x165   :  { %467 = vpow2.f32 %v415_v24  ;;  %v306_v28 = vpop.f32.mrb[1].mxu1 }
 0x166   :  { %469 = vpow2.f32 %v416_v26  ;;  %v308_v29 = vpop.f32.mrb[2].mxu1 }
 0x167   :  { %v310_v30 = vpop.f32.mrb[3].mxu1 }
 0x16d   :  { %v464_v31 = vpop.eup %463 }
 0x16e   :  { %v466_v32 = vpop.eup %465  ;;  %v325_v33 = vadd.f32 1.0, %v464_v31 }
 0x16f   :  { %v468_v34 = vpop.eup %467  ;;  %v326_v35 = vadd.f32 1.0, %v466_v32 }
 0x170   :  { %v470_v36 = vpop.eup %469  ;;  %471 = vrcp.f32 %v325_v33  ;;  %v327_v37 = vadd.f32 1.0, %v468_v34 }
 0x171   :  { %473 = vrcp.f32 %v326_v35  ;;  %v328_v38 = vadd.f32 1.0, %v470_v36 }
 0x172   :  { %475 = vrcp.f32 %v327_v37 }
 0x173   :  { %477 = vrcp.f32 %v328_v38 }
 0x17a   :  { %v472_v39 = vpop.eup %471 }
 0x17b   :  { %v474_v41 = vpop.eup %473  ;;  %v337_v42 = vmul.f32 %v472_v39, %v261_v19 }
 0x17c   :  { %v476_v43 = vpop.eup %475  ;;  %v338_v44 = vmul.f32 %v474_v41, %v263_v21 }
 0x17d   :  { %v478_v45 = vpop.eup %477  ;;  %v339_v46 = vmul.f32 %v476_v43, %v265_v23  ;;  %v341_v47 = vmul.f32 %v337_v42, %v304_v27 }
 0x17e   :  { %v340_v48 = vmul.f32 %v478_v45, %v267_v25  ;;  %v342_v49 = vmul.f32 %v338_v44, %v306_v28 }
 0x17f   :  { %v343_v50 = vmul.f32 %v339_v46, %v308_v29 }
 0x180   :  { %v344_v51 = vmul.f32 %v340_v48, %v310_v30 }
 0x181   :  { %v347_v52 = vpack.c.bf16 %v343_v50, %v341_v47 }
 0x182   :  { %v348_v53 = vpack.c.bf16 %v344_v51, %v342_v49 }
 0x184   :  { %381 = vmatprep.mubr.bf16.mxu0 %v348_v53 }
 0x185   :  { %382 = vmatmul.mubr.bf16.vlgmr.msra.gmra.mrb[4].mxu0 %v347_v52 }
 0x258   :  { %v383_v54 = vpop.f32.mrb[4].mxu0 }
 0x259   :  { %v385_v55 = vpop.f32.mrb[5].mxu0  ;;  %392 = vst [vmem:[#allocation10] sm:$0xff] %v383_v54 }
 0x25a   :  { %v386_v56 = vpop.f32.mrb[6].mxu0 }
 0x25b   :  { %v388_v57 = vpop.f32.mrb[7].mxu0  ;;  %393 = vst [vmem:[#allocation10 + $0x8] sm:$0xff] %v386_v56 }
 0x25c   :  { %578 = shalt.err (!%p575_p8)
}
 0x25d   :  { %s579_s17 = scalar_lea.hbm %s727_s4, 256 }
 0x25e   :  { %p580_p9 = scmp.ne.s32.totalorder %s727_s4, %s579_s17  ;;  %p583_p10 = scmp.lt.u32.totalorder %s579_s17, %s727_s4 }
 0x260   :  { %p585_p11 = pnand %p583_p10, %p580_p9 }
 0x262   :  { %588 = shalt.err (!%p585_p11)
}
 0x263   :  { %405 = dma.vmem_to_hbm [thread:$0]  %s400_s13, 256, %s727_s4, [#allocation4], %s599_s27, %s599_s27, %s600_s28  }
 0x264   :  { %595 = dma.done.wait [#allocation4], 256  }
 0x265   :  { %596 = vsyncadd [#allocation4], 4294967040 }
 0x266   :  { %409 = vsyncpa [#allocation3], 1 }
 0x267   :  { %410 = vsyncpa [#allocation6], 1 }
 0x268   :  { %411 = vsyncpa [#allocation9], 1 }
 0x269   :  { %412 = vsyncpa [#allocation4], 1 }

</bundles_post_ra>
